<compile_context>
chip_gen: v5e
topology: v5e:2x2
jax: 0.10.0
libtpu: 0.0.40
codegen_flags: <defaults>
</compile_context>

<pallas_src>
import math

import jax
import jax.numpy as jnp
from jax.experimental import pallas as pl
from jax.experimental.pallas import tpu as pltpu


def _round_up(x, m):
    return (x + m - 1) // m * m


def _cdiv(a, b):
    return -(-a // b)


def _gelu_exact(x):
    # exact GELU: 0.5 * x * (1 + erf(x / sqrt(2)))
    return 0.5 * x * (1.0 + jax.lax.erf(x * (1.0 / math.sqrt(2.0))))


def _make_mlp_kernel(th, n_chunks):
    """Kernel over one row tile; weights are fully resident in VMEM.

    The hidden dim (H_p = th * n_chunks) is reduced with a static chunk loop
    so the (tm, th) f32 GELU intermediate stays bounded; the f32 partial
    products accumulate in registers/VMEM temporaries and are stored once.
    """

    def kernel(x_ref, w1_ref, b1_ref, w2_ref, b2_ref, o_ref):
        x = x_ref[...]
        acc = jnp.zeros((x_ref.shape[0], o_ref.shape[1]), jnp.float32)
        for c in range(n_chunks):           # static -> unrolled
            lo, hi = c * th, (c + 1) * th
            # fc1 chunk: (tm, D_in_p) @ (D_in_p, th), f32 accumulation on MXU.
            h = jnp.dot(x, w1_ref[:, lo:hi],
                        preferred_element_type=jnp.float32)
            h = _gelu_exact(h + b1_ref[:, lo:hi])
            # fc2 partial product for this hidden chunk (cast h to the weight
            # dtype so the MXU runs the native bf16 path when enabled).
            acc = acc + jnp.dot(h.astype(w2_ref.dtype), w2_ref[lo:hi, :],
                                preferred_element_type=jnp.float32)
        o_ref[...] = (acc + b2_ref[...]).astype(o_ref.dtype)

    return kernel


def prepare_mlp_params(w1, b1, w2, b2, compute_dtype=jnp.bfloat16):
    """One-time weight preparation (pad to 128 lanes, cast to compute dtype).

    w1: (D_in, H), b1: (H,), w2: (H, D_out), b2: (D_out,)  --  (in, out)
    layout, i.e. the transpose of torch.nn.Linear.weight; numerically the
    same forward.  Hoisted out of the per-call path.
    """
    D_in, H = w1.shape
    H2, D_out = w2.shape
    assert H2 == H and b1.shape == (H,) and b2.shape == (D_out,)

    D_in_p = _round_up(D_in, 128)
    H_p = _round_up(H, 128)
    D_out_p = _round_up(D_out, 128)

    if (D_in_p, H_p) != (D_in, H):
        w1 = jnp.pad(w1, ((0, D_in_p - D_in), (0, H_p - H)))
    if (H_p, D_out_p) != (H, D_out):
        w2 = jnp.pad(w2, ((0, H_p - H), (0, D_out_p - D_out)))
    if H_p != H:
        b1 = jnp.pad(b1, (0, H_p - H))
    if D_out_p != D_out:
        b2 = jnp.pad(b2, (0, D_out_p - D_out))

    cd = jnp.dtype(compute_dtype)
    return dict(
        w1=w1.astype(cd),
        b1=b1.reshape(1, H_p).astype(jnp.float32),   # biases stay f32
        w2=w2.astype(cd),
        b2=b2.reshape(1, D_out_p).astype(jnp.float32),
        d_in=D_in, hidden=H, d_out=D_out, compute_dtype=cd,
    )


def mlp_pallas(x, params, *, tm=None, th=None):
    """x: (B, N, D_in) -> (B, N, D_out); params from prepare_mlp_params."""
    B, N, D_in = x.shape
    assert D_in == params["d_in"]
    w1p, b1p, w2p, b2p = params["w1"], params["b1"], params["w2"], params["b2"]
    cd = params["compute_dtype"]
    D_in_p, H_p = w1p.shape
    _, D_out_p = w2p.shape
    D_out = params["d_out"]
    out_dtype = x.dtype
    M = B * N
    M8 = _round_up(M, 8)

    # Row tile: large (weights are VMEM-resident, so more row tiles do NOT
    # cost extra weight traffic, but fewer tiles amortize the ~0.35us/step
    # overhead).  Multiple of 8 sublanes.  If the grid ends up odd and >1,
    # rebalance so both TensorCores (v7x megacore) get equal work.
    if tm is None:
        tm = min(1024, M8)
        grid_i = _cdiv(M8, tm)
        if grid_i > 1 and grid_i % 2 == 1:
            grid_i += 1
            tm = _round_up(_cdiv(M8, grid_i), 8)
    tm = _round_up(min(tm, M8), 8)
    M_pad = _round_up(M, tm)
    grid_i = M_pad // tm

    # Hidden chunk size (in-kernel reduction): bounds the (tm, th) f32
    # intermediate.  TODO(synk): for H/D too large for resident weights on
    # v7x (64 MiB VMEM), fall back to a streamed-weight grid.
    if th is None:
        th = H_p
        if H_p > 2048:
            for cand in (2048, 1024, 512, 256, 128):
                if H_p % cand == 0:
                    th = cand
                    break
    assert H_p % th == 0
    n_chunks = H_p // th

    # Activations: cast to compute dtype, pad only if needed.
    x2 = x.reshape(M, D_in)
    if x2.dtype != cd:
        x2 = x2.astype(cd)
    if M_pad != M or D_in_p != D_in:
        x2 = jnp.pad(x2, ((0, M_pad - M), (0, D_in_p - D_in)))

    # VMEM footprint estimate: double-buffered x/out tiles, resident weights
    # (2 buffers even for constant blocks), biases, f32 hidden/accumulator
    # temporaries.  Sized to the real need instead of a blanket 64 MiB.
    cdsz = cd.itemsize
    osz = jnp.dtype(out_dtype).itemsize
    fp = 2 * tm * D_in_p * cdsz + 2 * tm * D_out_p * osz
    fp += 2 * (D_in_p * H_p + H_p * D_out_p) * cdsz
    fp += 2 * (H_p + D_out_p) * 4
    fp += 2 * tm * th * 4 + tm * D_out_p * 4
    vmem_limit = min(max(int(fp * 1.5) + (4 << 20), 32 << 20), 128 << 20)

    cost = pl.CostEstimate(
        flops=2 * M * (D_in_p * H_p + H_p * D_out_p),
        transcendentals=M * H_p,
        bytes_accessed=int(x2.size * cdsz
                           + (w1p.size + w2p.size) * cdsz     # read once
                           + (b1p.size + b2p.size) * 4
                           + M_pad * D_out_p * osz),
    )

    out2 = pl.pallas_call(
        _make_mlp_kernel(th, n_chunks),
        out_shape=jax.ShapeDtypeStruct((M_pad, D_out_p), out_dtype),
        grid_spec=pltpu.PrefetchScalarGridSpec(
            num_scalar_prefetch=0,
            grid=(grid_i,),
            in_specs=[
                pl.BlockSpec((tm, D_in_p), lambda i: (i, 0)),
                # Constant index maps: weights/biases DMA'd once, stay in VMEM.
                pl.BlockSpec((D_in_p, H_p), lambda i: (0, 0)),
                pl.BlockSpec((1, H_p), lambda i: (0, 0)),
                pl.BlockSpec((H_p, D_out_p), lambda i: (0, 0)),
                pl.BlockSpec((1, D_out_p), lambda i: (0, 0)),
            ],
            out_specs=pl.BlockSpec((tm, D_out_p), lambda i: (i, 0)),
        ),
        compiler_params=pltpu.CompilerParams(
            dimension_semantics=("parallel",),
            vmem_limit_bytes=vmem_limit,
        ),
        cost_estimate=cost,
    )(x2, w1p, b1p, w2p, b2p)

    if D_out_p != D_out:
        out2 = out2[:, :D_out]
    if M_pad != M:
        out2 = out2[:M]
    return out2.reshape(B, N, D_out)


def mlp_reference(x, w1, b1, w2, b2, compute_dtype=jnp.float32):
    """Reference with the same operand dtypes as the kernel, f32 accumulation."""
    cd = jnp.dtype(compute_dtype)
    hp = jax.lax.Precision.HIGHEST
    xr = x.astype(cd).astype(jnp.float32)
    w1r = w1.astype(cd).astype(jnp.float32)
    w2r = w2.astype(cd).astype(jnp.float32)
    h = jnp.einsum("bnd,dh->bnh", xr, w1r, precision=hp) + b1
    h = _gelu_exact(h)
    if cd != jnp.float32:
        h = h.astype(cd).astype(jnp.float32)   # kernel casts h before fc2
    return jnp.einsum("bnh,ho->bno", h, w2r, precision=hp) + b2


if __name__ == "__main__":

    def make_params(key, d_in, d_hidden, d_out):
        kw1, kb1, kw2, kb2 = jax.random.split(key, 4)
        lim1 = 1.0 / math.sqrt(d_in)
        w1 = jax.random.uniform(kw1, (d_in, d_hidden), minval=-lim1,
                                maxval=lim1, dtype=jnp.float32)
        b1 = jax.random.uniform(kb1, (d_hidden,), minval=-lim1, maxval=lim1,
                                dtype=jnp.float32)
        lim2 = 1.0 / math.sqrt(d_hidden)
        w2 = jax.random.uniform(kw2, (d_hidden, d_out), minval=-lim2,
                                maxval=lim2, dtype=jnp.float32)
        b2 = jax.random.uniform(kb2, (d_out,), minval=-lim2, maxval=lim2,
                                dtype=jnp.float32)
        return w1, b1, w2, b2

    def run_case(key, B, N, d_in, d_hidden, d_out, compute_dtype, tol):
        kx, kp = jax.random.split(key)
        x = jax.random.normal(kx, (B, N, d_in), dtype=jnp.float32)
        w1, b1, w2, b2 = make_params(kp, d_in, d_hidden, d_out)

        params = prepare_mlp_params(w1, b1, w2, b2,
                                    compute_dtype=compute_dtype)
        y = jax.block_until_ready(mlp_pallas(x, params))
        assert y.shape == (B, N, d_out)
        assert y.dtype == x.dtype

        y_ref = mlp_reference(x, w1, b1, w2, b2, compute_dtype=compute_dtype)
        err = float(jnp.max(jnp.abs(y - y_ref.astype(y.dtype))))
        assert err <= tol, f"max abs err {err} > {tol}"

    key = jax.random.PRNGKey(0)
    k1, k2 = jax.random.split(key)
    # Default bf16 operand path (native MXU dtype); f32 accumulation.
    run_case(k1, 2, 8, 32, 128, 32, jnp.bfloat16, 2e-2)
    # f32 path; exercises row/feature padding and the in-kernel H reduction.
    run_case(k2, 2, 70, 48, 200, 48, jnp.float32, 2e-2)

    print("KERNEL_OK")
</pallas_src>

<mosaic_0001>
module attributes {stable_mosaic.version = 11 : i64} {
  func.func @kernel(%arg0: i32, %arg1: memref<16x128xbf16, #tpu.memory_space<vmem>>, %arg2: memref<128x128xbf16, #tpu.memory_space<vmem>>, %arg3: memref<1x128xf32, #tpu.memory_space<vmem>>, %arg4: memref<128x128xbf16, #tpu.memory_space<vmem>>, %arg5: memref<1x128xf32, #tpu.memory_space<vmem>>, %arg6: memref<16x128xf32, #tpu.memory_space<vmem>>) attributes {dimension_semantics = [#tpu.dimension_semantics<parallel>], iteration_bounds = array<i64: 1>, scalar_prefetch = 0 : i64, scratch_operands = 0 : i64, tpu.core_type = #tpu.core_type<tc>, window_params = [{transform_indices = @transform_0, window_bounds = array<i64: 16, 128>}, {pipeline_mode = #tpu.pipeline_mode<synchronous>, transform_indices = @transform_1, window_bounds = array<i64: 128, 128>}, {pipeline_mode = #tpu.pipeline_mode<synchronous>, transform_indices = @transform_2, window_bounds = array<i64: 1, 128>}, {pipeline_mode = #tpu.pipeline_mode<synchronous>, transform_indices = @transform_3, window_bounds = array<i64: 128, 128>}, {pipeline_mode = #tpu.pipeline_mode<synchronous>, transform_indices = @transform_4, window_bounds = array<i64: 1, 128>}, {transform_indices = @transform_5, window_bounds = array<i64: 16, 128>}]} {
    %c0 = arith.constant 0 : index
    %c0_0 = arith.constant 0 : index
    %0 = vector.load %arg1[%c0, %c0_0] : memref<16x128xbf16, #tpu.memory_space<vmem>>, vector<16x128xbf16>
    %cst = arith.constant 0.000000e+00 : f32
    %1 = vector.broadcast %cst : f32 to vector<16x128xf32>
    %c0_1 = arith.constant 0 : index
    %c0_2 = arith.constant 0 : index
    %2 = vector.load %arg2[%c0_1, %c0_2] : memref<128x128xbf16, #tpu.memory_space<vmem>>, vector<128x128xbf16>
    %cst_3 = arith.constant dense<0.000000e+00> : vector<16x128xf32>
    %3 = tpu.matmul %0, %2, %cst_3 {dimension_numbers = #tpu.dot_dimension_numbers<[1], [0], [0], [1], [0, 0, 1, 1], [], []>} : vector<16x128xbf16>, vector<128x128xbf16>, vector<16x128xf32> -> vector<16x128xf32>
    %c0_4 = arith.constant 0 : index
    %c0_5 = arith.constant 0 : index
    %4 = vector.load %arg3[%c0_4, %c0_5] : memref<1x128xf32, #tpu.memory_space<vmem>>, vector<1x128xf32>
    %5 = vector.broadcast %4 : vector<1x128xf32> to vector<16x128xf32>
    %6 = arith.addf %3, %5 : vector<16x128xf32>
    %cst_6 = arith.constant 5.000000e-01 : f32
    %7 = vector.broadcast %cst_6 : f32 to vector<16x128xf32>
    %8 = arith.mulf %7, %6 : vector<16x128xf32>
    %cst_7 = arith.constant 0.707106769 : f32
    %9 = vector.broadcast %cst_7 : f32 to vector<16x128xf32>
    %10 = arith.mulf %6, %9 : vector<16x128xf32>
    %11 = math.erf %10 : vector<16x128xf32>
    %cst_8 = arith.constant 1.000000e+00 : f32
    %12 = vector.broadcast %cst_8 : f32 to vector<16x128xf32>
    %13 = arith.addf %12, %11 : vector<16x128xf32>
    %14 = arith.mulf %8, %13 : vector<16x128xf32>
    %15 = arith.truncf %14 : vector<16x128xf32> to vector<16x128xbf16>
    %c0_9 = arith.constant 0 : index
    %c0_10 = arith.constant 0 : index
    %16 = vector.load %arg4[%c0_9, %c0_10] : memref<128x128xbf16, #tpu.memory_space<vmem>>, vector<128x128xbf16>
    %cst_11 = arith.constant dense<0.000000e+00> : vector<16x128xf32>
    %17 = tpu.matmul %15, %16, %cst_11 {dimension_numbers = #tpu.dot_dimension_numbers<[1], [0], [0], [1], [0, 0, 1, 1], [], []>} : vector<16x128xbf16>, vector<128x128xbf16>, vector<16x128xf32> -> vector<16x128xf32>
    %18 = arith.addf %1, %17 : vector<16x128xf32>
    %c0_12 = arith.constant 0 : index
    %c0_13 = arith.constant 0 : index
    %19 = vector.load %arg5[%c0_12, %c0_13] : memref<1x128xf32, #tpu.memory_space<vmem>>, vector<1x128xf32>
    %20 = vector.broadcast %19 : vector<1x128xf32> to vector<16x128xf32>
    %21 = arith.addf %18, %20 : vector<16x128xf32>
    %c0_14 = arith.constant 0 : index
    %c0_15 = arith.constant 0 : index
    %22 = vector.load %arg6[%c0_14, %c0_15] : memref<16x128xf32, #tpu.memory_space<vmem>>, vector<16x128xf32>
    tpu.vector_store %arg6[%c0_14, %c0_15], %21 {strides = array<i32>} : memref<16x128xf32, #tpu.memory_space<vmem>>, vector<16x128xf32>,
    return
  }
  func.func @transform_0(%arg0: i32) -> (i32, i32) {
    %c0_i32 = arith.constant 0 : i32
    %c0_i32_0 = arith.constant 0 : i32
    return %arg0, %c0_i32 : i32, i32
  }
  func.func @transform_1(%arg0: i32) -> (i32, i32) {
    %c0_i32 = arith.constant 0 : i32
    %c0_i32_0 = arith.constant 0 : i32
    %c0_i32_1 = arith.constant 0 : i32
    return %c0_i32, %c0_i32_0 : i32, i32
  }
  func.func @transform_2(%arg0: i32) -> (i32, i32) {
    %c0_i32 = arith.constant 0 : i32
    %c0_i32_0 = arith.constant 0 : i32
    %c0_i32_1 = arith.constant 0 : i32
    return %c0_i32, %c0_i32_0 : i32, i32
  }
  func.func @transform_3(%arg0: i32) -> (i32, i32) {
    %c0_i32 = arith.constant 0 : i32
    %c0_i32_0 = arith.constant 0 : i32
    %c0_i32_1 = arith.constant 0 : i32
    return %c0_i32, %c0_i32_0 : i32, i32
  }
  func.func @transform_4(%arg0: i32) -> (i32, i32) {
    %c0_i32 = arith.constant 0 : i32
    %c0_i32_0 = arith.constant 0 : i32
    %c0_i32_1 = arith.constant 0 : i32
    return %c0_i32, %c0_i32_0 : i32, i32
  }
  func.func @transform_5(%arg0: i32) -> (i32, i32) {
    %c0_i32 = arith.constant 0 : i32
    %c0_i32_0 = arith.constant 0 : i32
    return %arg0, %c0_i32 : i32, i32
  }
}

</mosaic_0001>

<bundles_post_ra>
// kernel: tpu_custom_call.1
= control target key start
LH: loop header
LB: loop body
LE: loop exit
PB: predicated region body
PF: predicated region fallthrough
CT: control target
= control target key end

     0   :  { %10 = vsyncpa [#allocation3], 0  ;;  %s628_s0 = inlined_call_operand.hbm [shape: bf16[16,128], index: 0, kind: input, shape index: {}]   ;;  %s629_s1 = inlined_call_operand.hbm [shape: bf16[128,128], index: 1, kind: input, shape index: {}]   ;;  %s630_s2 = inlined_call_operand.vmem [shape: f32[1,128], index: 2, kind: input, shape index: {}]   ;;  %s631_s3 = inlined_call_operand.hbm [shape: bf16[128,128], index: 3, kind: input, shape index: {}]   ;;  %s632_s4 = inlined_call_operand.vmem [shape: f32[1,128], index: 4, kind: input, shape index: {}]   ;;  %s633_s5 = inlined_call_operand.hbm [shape: f32[16,128], index: 5, kind: output, shape index: {}]  }
   0x1   :  { %11 = vsyncpa [#allocation6], 0 }
   0x2   :  { %12 = vsyncpa [#allocation4], 0  ;;  %s30_s20 = sshll.u32 %s629_s1, 4  ;;  %s554_s21 = smov [#allocation5]   ;;  %s31_s20 = int_to_ptr.hbm [resolvable:$true] %s30_s20 }
   0x3   :  { %s32_s22 = sshll.u32 %s554_s21, 4  ;;  %s17_s25 = sshll.u32 %s628_s0, 4  ;;  %s33_s22 = int_to_ptr.vmem [resolvable:$true] %s32_s22  ;;  %s18_s25 = int_to_ptr.hbm [resolvable:$true] %s17_s25 }
   0x4   :  { %s555_s26 = smov 64   ;;  %s556_s27 = smov 4  }
   0x5   :  { %38 = dma.hbm_to_vmem [thread:$0]  %s31_s20, 1024, %s33_s22, [#allocation6], %s555_s26, %s555_s26, %s556_s27  }
   0x6   :  { %s557_s28 = smov [#allocation2]   ;;  %s45_s7 = sshll.u32 %s631_s3, 4  ;;  %s46_s7 = int_to_ptr.hbm [resolvable:$true] %s45_s7 }
   0x7   :  { %s19_s29 = sshll.u32 %s557_s28, 4  ;;  %s558_s1 = smov [#allocation7]   ;;  %s20_s29 = int_to_ptr.vmem [resolvable:$true] %s19_s29 }
   0x8   :  { %25 = dma.hbm_to_vmem [thread:$0]  %s18_s25, 128, %s20_s29, [#allocation3], %s555_s26, %s555_s26, %s556_s27  }
   0x9   :  { %s47_s8 = sshll.u32 %s558_s1, 4  ;;  %s48_s8 = int_to_ptr.vmem [resolvable:$true] %s47_s8 }
   0xa   :  { %53 = dma.hbm_to_vmem [thread:$0]  %s46_s7, 1024, %s48_s8, [#allocation6], %s555_s26, %s555_s26, %s556_s27  }
   0xb   :  { %548 = dma.done.wait [#allocation3], 128  }
   0xc   :  { %549 = vsyncadd [#allocation3], 4294967168 }
   0xd   :  { %550 = dma.done.wait [#allocation6], 2048  }
   0xe   :  { %551 = vsyncadd [#allocation6], 4294965248  ;;  %v429_v0 = vld [vmem:[#allocation5 + $0x38] sm:$0xff]  ;;  %v428_v1 = vld [vmem:[#allocation5 + $0x30] sm:$0xff]  ;;  %s559_s10 = smov [#allocation8]   ;;  %s337_s14 = sshll.u32 %s633_s5, 4  ;;  %s338_s14 = int_to_ptr.hbm [resolvable:$true] %s337_s14 }
   0xf   :  { %144 = vmatpush.bf16.msra.mxu0 %v429_v0  ;;  %v427_v2 = vld [vmem:[#allocation5 + $0x28] sm:$0xff]  ;;  %v426_v3 = vld [vmem:[#allocation5 + $0x20] sm:$0xff]  ;;  %v425_v4 = vld [vmem:[#allocation5 + $0x18] sm:$0xff]  ;;  %s335_s11 = sshll.u32 %s559_s10, 4  ;;  %s560_s15 = smov 128   ;;  %s336_s11 = int_to_ptr.vmem [resolvable:$true] %s335_s11 }
  0x10   :  { %v424_v5 = vld [vmem:[#allocation5 + $0x10] sm:$0xff]  ;;  %v423_v6 = vld [vmem:[#allocation5 + $0x8] sm:$0xff]  ;;  %v422_v7 = vld [vmem:[#allocation5] sm:$0xff]  ;;  %s561_s16 = smov 8  }
  0x11   :  { %v421_v8 = vld [vmem:[#allocation2] sm:$0xff]  ;;  %v436_v14 = vld [vmem:[#allocation7 + $0x30] sm:$0xff]  ;;  %v435_v16 = vld [vmem:[#allocation7 + $0x28] sm:$0xff] }
  0x12   :  { %v446_v9 = vld [vmem:[%s630_s2] ss:$0 sm:$0xff]  ;;  %v434_v21 = vld [vmem:[#allocation7 + $0x20] sm:$0xff]  ;;  %v432_v33 = vld [vmem:[#allocation7 + $0x10] sm:$0xff] }
  0x13   :  { %145 = vmatpush.bf16.msra.mxu0 %v428_v1  ;;  %v437_v10 = vld [vmem:[#allocation7 + $0x38] sm:$0xff]  ;;  %v431_v41 = vld [vmem:[#allocation7 + $0x8] sm:$0xff]  ;;  %v430_v48 = vld [vmem:[#allocation7] sm:$0xff] }
  0x14   :  { %315 = vmatpush.bf16.msra.mxu1 %v437_v10  ;;  %v433_v27 = vld [vmem:[#allocation7 + $0x18] sm:$0xff] }
  0x17   :  { %146 = vmatpush.bf16.msra.mxu0 %v427_v2 }
  0x18   :  { %316 = vmatpush.bf16.msra.mxu1 %v436_v14 }
  0x1b   :  { %147 = vmatpush.bf16.msra.mxu0 %v426_v3 }
  0x1c   :  { %317 = vmatpush.bf16.msra.mxu1 %v435_v16 }
  0x1f   :  { %148 = vmatpush.bf16.msra.mxu0 %v425_v4 }
  0x20   :  { %318 = vmatpush.bf16.msra.mxu1 %v434_v21 }
  0x23   :  { %149 = vmatpush.bf16.msra.mxu0 %v424_v5 }
  0x24   :  { %319 = vmatpush.bf16.msra.mxu1 %v433_v27 }
  0x27   :  { %150 = vmatpush.bf16.msra.mxu0 %v423_v6 }
  0x28   :  { %320 = vmatpush.bf16.msra.mxu1 %v432_v33 }
  0x2b   :  { %151 = vmatpush.bf16.msra.mxu0 %v422_v7 }
  0x2c   :  { %321 = vmatpush.bf16.msra.mxu1 %v431_v41 }
  0x2e   :  { %152 = vmatmul.bf16.vlgmr.msra.gmra.mxu0 %v421_v8 }
  0x30   :  { %322 = vmatpush.bf16.msra.mxu1 %v430_v48 }
  0xab   :  { %v153_v11 = vpop.f32.mrf.mxu0 }
  0xac   :  { %v604_v12 = vadd.f32 %v446_v9, %v153_v11 }
  0xae   :  { %v607_v13 = vmul.f32 0.70710677, %v604_v12 }
  0xb0   :  { %v162_v15 = vmul.f32 %v607_v13, %v607_v13 }
  0xb2   :  { %v163_v17 = vmin.f32 %v162_v15, 16.0 }
  0xb3   :  { %v155_v18 = vpop.f32.mrf.mxu0 }
  0xb4   :  { %v164_v19 = vmul.f32 2.1237322e-06, %v163_v17  ;;  %v611_v20 = vadd.f32 %v446_v9, %v155_v18  ;;  %v175_v22 = vmul.f32 3.8918573e-05, %v163_v17 }
  0xb6   :  { %v165_v23 = vadd.f32 0.00028619796, %v164_v19  ;;  %v614_v24 = vmul.f32 0.70710677, %v611_v20  ;;  %v176_v25 = vadd.f32 0.001143296, %v175_v22 }
  0xb8   :  { %v202_v26 = vmul.f32 %v614_v24, %v614_v24  ;;  %v166_v28 = vmul.f32 %v165_v23, %v163_v17  ;;  %v177_v29 = vmul.f32 %v176_v25, %v163_v17 }
  0xba   :  { %v203_v30 = vmin.f32 %v202_v26, 16.0  ;;  %v178_v31 = vadd.f32 0.014752088, %v177_v29  ;;  %v167_v35 = vadd.f32 0.0036580483, %v166_v28 }
  0xbc   :  { %v204_v32 = vmul.f32 2.1237322e-06, %v203_v30  ;;  %v215_v34 = vmul.f32 3.8918573e-05, %v203_v30  ;;  %v179_v36 = vmul.f32 %v178_v31, %v163_v17  ;;  %v168_v43 = vmul.f32 %v167_v35, %v163_v17 }
  0xbd   :  { %v159_v35 = vmul.f32 0.5, %v611_v20 }
  0xbe   :  { %v205_v37 = vadd.f32 0.00028619796, %v204_v32  ;;  %v216_v38 = vadd.f32 0.001143296, %v215_v34  ;;  %v180_v39 = vadd.f32 0.112945676, %v179_v36 }
  0xbf   :  { %v169_v50 = vadd.f32 0.05243302, %v168_v43  ;;  %v158_v34 = vmul.f32 0.5, %v604_v12 }
  0xc0   :  { %v206_v40 = vmul.f32 %v205_v37, %v203_v30  ;;  %v217_v42 = vmul.f32 %v216_v38, %v203_v30  ;;  %v181_v44 = vmul.f32 %v180_v39, %v163_v17 }
  0xc1   :  { %v170_v56 = vmul.f32 %v169_v50, %v163_v17 }
  0xc2   :  { %v207_v45 = vadd.f32 0.0036580483, %v206_v40  ;;  %v218_v46 = vadd.f32 0.014752088, %v217_v42  ;;  %v182_v47 = vadd.f32 0.4994258, %v181_v44 }
  0xc3   :  { %v171_v60 = vadd.f32 0.18741608, %v170_v56 }
  0xc4   :  { %v219_v49 = vmul.f32 %v218_v46, %v203_v30  ;;  %v183_v51 = vmul.f32 %v182_v47, %v163_v17  ;;  %v208_v52 = vmul.f32 %v207_v45, %v203_v30 }
  0xc5   :  { %v172_v1 = vmul.f32 %v171_v60, %v163_v17 }
  0xc6   :  { %v220_v53 = vadd.f32 0.112945676, %v219_v49  ;;  %v184_v54 = vadd.f32 1.0, %v183_v51  ;;  %v209_v57 = vadd.f32 0.05243302, %v208_v52 }
  0xc7   :  { %v173_v7 = vadd.f32 1.1283791, %v172_v1 }
  0xc8   :  { %v221_v55 = vmul.f32 %v220_v53, %v203_v30  ;;  %448 = vrcp.f32 %v184_v54  ;;  %v210_v61 = vmul.f32 %v209_v57, %v203_v30  ;;  %v196_v4 = vand.u32 2147483648, %v184_v54 }
  0xc9   :  { %v194_v6 = vand.u32 2147483647, %v184_v54  ;;  %vm190_vm1 = vweird.f32 %v184_v54  ;;  %v174_v16 = vmul.f32 %v173_v7, %v607_v13 }
  0xca   :  { %v222_v58 = vadd.f32 0.4994258, %v221_v55  ;;  %v211_v2 = vadd.f32 0.18741608, %v210_v61  ;;  %v197_v11 = vor.u32 1.1754944e-38, %v196_v4 }
  0xcb   :  { %vm195_vm3 = vcmp.eq.f32.partialorder %v194_v6, 8.507059e+37 }
  0xcc   :  { %v223_v59 = vmul.f32 %v222_v58, %v203_v30  ;;  %v212_v9 = vmul.f32 %v211_v2, %v203_v30 }
  0xce   :  { %v224_v62 = vadd.f32 1.0, %v223_v59  ;;  %v449_v63 = vpop.eup %448  ;;  %v213_v19 = vadd.f32 1.1283791, %v212_v9 }
  0xcf   :  { %v186_v0 = vmul.f32 %v449_v63, %v184_v54  ;;  %vm191_vm0 = vweird.f32 %v449_v63 }
  0xd0   :  { %450 = vrcp.f32 %v224_v62  ;;  %vm192_vm2 = vmor %vm190_vm1, %vm191_vm0  ;;  %v236_v21 = vand.u32 2147483648, %v224_v62  ;;  %v234_v25 = vand.u32 2147483647, %v224_v62  ;;  %vm230_vm5 = vweird.f32 %v224_v62 }
  0xd1   :  { %v187_v3 = vsub.f32 1.0, %v186_v0  ;;  %v214_v28 = vmul.f32 %v213_v19, %v614_v24  ;;  %v447_v24 = vld [vmem:[%s632_s4] ss:$0 sm:$0xff] }
  0xd2   :  { %v237_v27 = vor.u32 1.1754944e-38, %v236_v21  ;;  %vm235_vm7 = vcmp.eq.f32.partialorder %v234_v25, 8.507059e+37 }
  0xd3   :  { %v188_v5 = vmul.f32 %v449_v63, %v187_v3 }
  0xd5   :  { %v189_v10 = vadd.f32 %v449_v63, %v188_v5 }
  0xd6   :  { %v451_v8 = vpop.eup %450 }
  0xd7   :  { %v226_v14 = vmul.f32 %v451_v8, %v224_v62  ;;  %v193_v15 = vsel %vm192_vm2, %v449_v63, %v189_v10  ;;  %vm231_vm4 = vweird.f32 %v451_v8 }
  0xd8   :  { %v198_v18 = vsel %vm195_vm3, %v197_v11, %v193_v15  ;;  %vm232_vm6 = vmor %vm230_vm5, %vm231_vm4 }
  0xd9   :  { %v227_v17 = vsub.f32 1.0, %v226_v14  ;;  %v199_v22 = vmul.f32 %v198_v18, %v174_v16 }
  0xdb   :  { %v228_v23 = vmul.f32 %v451_v8, %v227_v17  ;;  %v387_v29 = vclamps-f32 %v199_v22, 1.0 }
  0xdd   :  { %v229_v26 = vadd.f32 %v451_v8, %v228_v23  ;;  %v242_v33 = vadd.f32 1.0, %v387_v29 }
  0xdf   :  { %v233_v30 = vsel %vm232_vm6, %v451_v8, %v229_v26  ;;  %v244_v37 = vmul.f32 %v242_v33, %v158_v34 }
  0xe0   :  { %v238_v31 = vsel %vm235_vm7, %v237_v27, %v233_v30 }
  0xe1   :  { %v239_v32 = vmul.f32 %v238_v31, %v214_v28 }
  0xe3   :  { %v388_v13 = vclamps-f32 %v239_v32, 1.0 }
  0xe5   :  { %v243_v36 = vadd.f32 1.0, %v388_v13 }
  0xe7   :  { %v245_v38 = vmul.f32 %v243_v36, %v159_v35 }
  0xe9   :  { %v246_v39 = vpack.c.bf16 %v245_v38, %v244_v37 }
  0xeb   :  { %323 = vmatmul.bf16.vlgmr.msra.gmra.mxu1 %v246_v39 }
 0x168   :  { %v324_v40 = vpop.f32.mrf.mxu1 }
 0x169   :  { %v325_v41 = vadd.f32 %v447_v24, %v324_v40 }
 0x16b   :  { %329 = vst [vmem:[#allocation8] sm:$0xff] %v325_v41 }
 0x170   :  { %v326_v12 = vpop.f32.mrf.mxu1 }
 0x171   :  { %v327_v20 = vadd.f32 %v447_v24, %v326_v12 }
 0x173   :  { %330 = vst [vmem:[#allocation8 + $0x8] sm:$0xff] %v327_v20 }
 0x174   :  { %343 = dma.vmem_to_hbm [thread:$0]  %s336_s11, 256, %s338_s14, [#allocation4], %s560_s15, %s560_s15, %s561_s16  }
 0x175   :  { %552 = dma.done.wait [#allocation4], 256  }
 0x176   :  { %553 = vsyncadd [#allocation4], 4294967040 }
 0x177   :  { %348 = vsyncpa [#allocation3], 1 }
 0x178   :  { %349 = vsyncpa [#allocation6], 1 }
 0x179   :  { %350 = vsyncpa [#allocation4], 1 }

</bundles_post_ra>
